<compile_context>
chip_gen: v5e
topology: v5e:2x2
jax: 0.10.0
libtpu: 0.0.40
codegen_flags: <defaults>
</compile_context>

<pallas_src>
import functools

import jax
import jax.numpy as jnp
import numpy as np
from jax import lax
from jax.experimental import pallas as pl
from jax.experimental.pallas import tpu as pltpu


def _sigmoid(v):
    # Exact sigmoid expressed via tanh (single EUP op); same math as torch.sigmoid.
    return 0.5 * (jnp.tanh(0.5 * v) + 1.0)


# ----------------------------------------------------------------------------
# Pallas kernel: GRU recurrence + fused Linear heads + power / unit-modulus norm
# ----------------------------------------------------------------------------
def _gru_kernel(x_ref, wih_ref, bih_ref, whh_ref, bhh_ref, whead_ref, bhead_ref,
                bs_ref, irs_ref, proj_ref,
                *, num_reflectors, total_power_constraint):
    B, T, H3 = proj_ref.shape
    H = H3 // 3
    o_bs = bs_ref.shape[1]

    # --- Hoisted input projection: ONE big MXU matmul over all B*T rows. -----
    proj = (jnp.dot(x_ref[...], wih_ref[...], preferred_element_type=jnp.float32)
            + bih_ref[...])                                    # (B*T, 3H)
    for b in range(B):                                         # stage into VMEM scratch
        proj_ref[b] = proj[b * T:(b + 1) * T, :]

    whh = whh_ref[...]                                         # (H, 3H), loaded once
    bhh = bhh_ref[...]                                         # (1, 3H)

    # --- Serial GRU recurrence, statically unrolled over T. ------------------
    # Only h @ Whh^T + gate math sits on the serial dependency chain.
    h = jnp.zeros((B, H), jnp.float32)
    for t in range(T):
        p_t = proj_ref[:, t, :]                                # (B, 3H)
        g_h = jnp.dot(h, whh, preferred_element_type=jnp.float32) + bhh
        r = _sigmoid(p_t[:, 0 * H:1 * H] + g_h[:, 0 * H:1 * H])
        z = _sigmoid(p_t[:, 1 * H:2 * H] + g_h[:, 1 * H:2 * H])
        n = jnp.tanh(p_t[:, 2 * H:3 * H] + r * g_h[:, 2 * H:3 * H])
        h = (1.0 - z) * n + z * h

    # --- Fused output heads: single matmul, then static lane slices. ---------
    heads = (jnp.dot(h, whead_ref[...], preferred_element_type=jnp.float32)
             + bhead_ref[...])                                 # (B, o_bs + o_irs)
    out_bs = heads[:, :o_bs]
    out_irs = heads[:, o_bs:]

    # --- BS power normalization (rsqrt on EUP instead of sqrt + divide). -----
    sumsq = jnp.sum(out_bs * out_bs, axis=1, keepdims=True)    # (B, 1)
    sqrt_p = float(total_power_constraint) ** 0.5
    bs_ref[...] = out_bs * (sqrt_p * lax.rsqrt(sumsq))

    # --- IRS unit-modulus normalization. --------------------------------------
    R = num_reflectors
    n_irs = out_irs.shape[1]
    t1 = out_irs[:, :R]
    t2 = out_irs[:, n_irs - R:]
    inv = lax.rsqrt(t1 * t1 + t2 * t2)
    irs_ref[...] = jnp.concatenate([t1 * inv, t2 * inv], axis=1)


# ----------------------------------------------------------------------------
# Wrapper: parameter plumbing + pallas_call
# ----------------------------------------------------------------------------
def gru_forward(x, w, *, num_reflectors, total_power_constraint):
    B, T, I = x.shape
    H = w["w_hh"].shape[1]          # w_hh is (3H, H)
    o_bs = w["w_bs"].shape[0]
    o_irs = w["w_irs"].shape[0]

    f32 = jnp.float32
    # Free row-major reshape (no HBM transpose); row index = b*T + t.
    x2d = x.reshape(B * T, I).astype(f32)
    wih_t = w["w_ih"].T.astype(f32)                                  # (I, 3H)
    whh_t = w["w_hh"].T.astype(f32)                                  # (H, 3H)
    bih = w["b_ih"].reshape(1, 3 * H).astype(f32)
    bhh = w["b_hh"].reshape(1, 3 * H).astype(f32)
    # Fuse both output heads into a single (H, o_bs + o_irs) weight.
    w_heads = jnp.concatenate([w["w_bs"].T, w["w_irs"].T], axis=1).astype(f32)
    b_heads = jnp.concatenate([w["b_bs"], w["b_irs"]]).reshape(1, o_bs + o_irs).astype(f32)

    kernel = functools.partial(
        _gru_kernel,
        num_reflectors=int(num_reflectors),
        total_power_constraint=float(total_power_constraint),
    )
    vmem = pl.BlockSpec(memory_space=pltpu.MemorySpace.VMEM)
    bs, irs = pl.pallas_call(
        kernel,
        out_shape=(jax.ShapeDtypeStruct((B, o_bs), jnp.float32),
                   jax.ShapeDtypeStruct((B, 2 * num_reflectors), jnp.float32)),
        in_specs=[vmem] * 7,
        out_specs=(vmem, vmem),
        scratch_shapes=[pltpu.VMEM((B, T, 3 * H), jnp.float32)],
    )(x2d, wih_t, bih, whh_t, bhh, w_heads, b_heads)

    # The concat of the two normalized outputs is done here (cheap XLA op)
    # instead of inside the kernel.
    out = jnp.concatenate([bs, irs], axis=1)
    return {"out_BS": bs, "out_IRS": irs, "out": out, "in": x}


# ----------------------------------------------------------------------------
# Deterministic PyTorch-style parameter init: U(-1/sqrt(H), 1/sqrt(H))
# ----------------------------------------------------------------------------
def init_weights(key, n_inputs, n_neurons, n_outputs_bs, n_outputs_irs):
    ks = jax.random.split(key, 8)
    k = 1.0 / np.sqrt(n_neurons)

    def u(kk, shape):
        return jax.random.uniform(kk, shape, jnp.float32, -k, k)

    H = n_neurons
    return {
        "w_ih": u(ks[0], (3 * H, n_inputs)),   # [r; z; n] gate order (PyTorch)
        "w_hh": u(ks[1], (3 * H, H)),
        "b_ih": u(ks[2], (3 * H,)),
        "b_hh": u(ks[3], (3 * H,)),
        "w_bs": u(ks[4], (n_outputs_bs, H)),
        "b_bs": u(ks[5], (n_outputs_bs,)),
        "w_irs": u(ks[6], (n_outputs_irs, H)),
        "b_irs": u(ks[7], (n_outputs_irs,)),
    }


# ----------------------------------------------------------------------------
# Pure-JAX reference (mirrors the PyTorch forward) for validation
# ----------------------------------------------------------------------------
def reference_forward(x, w, *, num_reflectors, total_power_constraint):
    B, T, _ = x.shape
    H = w["w_hh"].shape[1]
    h = jnp.zeros((B, H), jnp.float32)
    for t in range(T):
        gx = x[:, t, :] @ w["w_ih"].T + w["b_ih"]
        gh = h @ w["w_hh"].T + w["b_hh"]
        r = _sigmoid(gx[:, :H] + gh[:, :H])
        z = _sigmoid(gx[:, H:2 * H] + gh[:, H:2 * H])
        n = jnp.tanh(gx[:, 2 * H:] + r * gh[:, 2 * H:])
        h = (1.0 - z) * n + z * h
    out_bs = h @ w["w_bs"].T + w["b_bs"]
    out_irs = h @ w["w_irs"].T + w["b_irs"]
    frob = jnp.sqrt(jnp.sum(out_bs ** 2, axis=1))
    bs_norm = out_bs * (total_power_constraint ** 0.5 / frob)[:, None]
    R = num_reflectors
    t1 = out_irs[:, :R]
    t2 = out_irs[:, out_irs.shape[1] - R:]
    factor = jnp.sqrt(t1 ** 2 + t2 ** 2)
    irs_norm = jnp.concatenate([t1 / factor, t2 / factor], axis=1)
    return bs_norm, irs_norm, jnp.concatenate([bs_norm, irs_norm], axis=1)


if __name__ == "__main__":
    model_params = {
        "n_inputs": 16,
        "n_neurons": 32,
        "n_layers": 1,
        "bi_directional": False,
        "n_outputs_BS": 8,
        "n_outputs_IRS": 16,
    }
    params = {"total_power_constraint": 10.0, "num_reflectors": 8}

    B, T = 2, 8
    key = jax.random.PRNGKey(0)
    k_x, k_w = jax.random.split(key)
    x = jax.random.normal(k_x, (B, T, model_params["n_inputs"]), jnp.float32)
    weights = init_weights(k_w, model_params["n_inputs"], model_params["n_neurons"],
                           model_params["n_outputs_BS"], model_params["n_outputs_IRS"])

    result = gru_forward(
        x, weights,
        num_reflectors=params["num_reflectors"],
        total_power_constraint=params["total_power_constraint"],
    )
    jax.block_until_ready(result)

    ref_bs, ref_irs, ref_out = reference_forward(
        x, weights,
        num_reflectors=params["num_reflectors"],
        total_power_constraint=params["total_power_constraint"],
    )
    np.testing.assert_allclose(np.asarray(result["out_BS"]), np.asarray(ref_bs),
                               rtol=5e-5, atol=5e-5)
    np.testing.assert_allclose(np.asarray(result["out_IRS"]), np.asarray(ref_irs),
                               rtol=5e-5, atol=5e-5)
    np.testing.assert_allclose(np.asarray(result["out"]), np.asarray(ref_out),
                               rtol=5e-5, atol=5e-5)

    print("KERNEL_OK")
</pallas_src>

<mosaic_0001>
module attributes {stable_mosaic.version = 11 : i64} {
  func.func @_gru_kernel(%arg0: memref<16x16xf32, #tpu.memory_space<vmem>>, %arg1: memref<16x96xf32, #tpu.memory_space<vmem>>, %arg2: memref<1x96xf32, #tpu.memory_space<vmem>>, %arg3: memref<32x96xf32, #tpu.memory_space<vmem>>, %arg4: memref<1x96xf32, #tpu.memory_space<vmem>>, %arg5: memref<32x24xf32, #tpu.memory_space<vmem>>, %arg6: memref<1x24xf32, #tpu.memory_space<vmem>>, %arg7: memref<2x8xf32, #tpu.memory_space<vmem>>, %arg8: memref<2x16xf32, #tpu.memory_space<vmem>>, %arg9: memref<2x8x96xf32, #tpu.memory_space<vmem>>) attributes {dimension_semantics = [], scalar_prefetch = 0 : i64, scratch_operands = 1 : i64, tpu.core_type = #tpu.core_type<tc>} {
    %c0 = arith.constant 0 : index
    %c0_0 = arith.constant 0 : index
    %0 = vector.load %arg0[%c0, %c0_0] : memref<16x16xf32, #tpu.memory_space<vmem>>, vector<16x16xf32>
    %c0_1 = arith.constant 0 : index
    %c0_2 = arith.constant 0 : index
    %1 = vector.load %arg1[%c0_1, %c0_2] : memref<16x96xf32, #tpu.memory_space<vmem>>, vector<16x96xf32>
    %cst = arith.constant dense<0.000000e+00> : vector<16x96xf32>
    %2 = tpu.matmul %0, %1, %cst {dimension_numbers = #tpu.dot_dimension_numbers<[1], [0], [0], [1], [0, 0, 1, 1], [], []>} : vector<16x16xf32>, vector<16x96xf32>, vector<16x96xf32> -> vector<16x96xf32>
    %c0_3 = arith.constant 0 : index
    %c0_4 = arith.constant 0 : index
    %3 = vector.load %arg2[%c0_3, %c0_4] : memref<1x96xf32, #tpu.memory_space<vmem>>, vector<1x96xf32>
    %4 = vector.broadcast %3 : vector<1x96xf32> to vector<16x96xf32>
    %5 = arith.addf %2, %4 : vector<16x96xf32>
    %6 = vector.extract_strided_slice %5 {offsets = [0, 0], sizes = [8, 96], strides = [1, 1]} : vector<16x96xf32> to vector<8x96xf32>
    %c0_5 = arith.constant 0 : index
    %c0_6 = arith.constant 0 : index
    %c0_7 = arith.constant 0 : index
    %7 = vector.load %arg9[%c0_5, %c0_6, %c0_7] : memref<2x8x96xf32, #tpu.memory_space<vmem>>, vector<1x8x96xf32>
    %8 = vector.shape_cast %7 : vector<1x8x96xf32> to vector<8x96xf32>
    %9 = vector.shape_cast %6 : vector<8x96xf32> to vector<1x8x96xf32>
    tpu.vector_store %arg9[%c0_5, %c0_6, %c0_7], %9 {strides = array<i32>} : memref<2x8x96xf32, #tpu.memory_space<vmem>>, vector<1x8x96xf32>,
    %10 = vector.extract_strided_slice %5 {offsets = [8, 0], sizes = [8, 96], strides = [1, 1]} : vector<16x96xf32> to vector<8x96xf32>
    %c1 = arith.constant 1 : index
    %c0_8 = arith.constant 0 : index
    %c0_9 = arith.constant 0 : index
    %11 = vector.load %arg9[%c1, %c0_8, %c0_9] : memref<2x8x96xf32, #tpu.memory_space<vmem>>, vector<1x8x96xf32>
    %12 = vector.shape_cast %11 : vector<1x8x96xf32> to vector<8x96xf32>
    %13 = vector.shape_cast %10 : vector<8x96xf32> to vector<1x8x96xf32>
    tpu.vector_store %arg9[%c1, %c0_8, %c0_9], %13 {strides = array<i32>} : memref<2x8x96xf32, #tpu.memory_space<vmem>>, vector<1x8x96xf32>,
    %c0_10 = arith.constant 0 : index
    %c0_11 = arith.constant 0 : index
    %14 = vector.load %arg3[%c0_10, %c0_11] : memref<32x96xf32, #tpu.memory_space<vmem>>, vector<32x96xf32>
    %c0_12 = arith.constant 0 : index
    %c0_13 = arith.constant 0 : index
    %15 = vector.load %arg4[%c0_12, %c0_13] : memref<1x96xf32, #tpu.memory_space<vmem>>, vector<1x96xf32>
    %cst_14 = arith.constant 0.000000e+00 : f32
    %16 = vector.broadcast %cst_14 : f32 to vector<2x32xf32>
    %c0_15 = arith.constant 0 : index
    %c0_16 = arith.constant 0 : index
    %c0_17 = arith.constant 0 : index
    %17 = vector.load %arg9[%c0_15, %c0_16, %c0_17] : memref<2x8x96xf32, #tpu.memory_space<vmem>>, vector<2x1x96xf32>
    %18 = vector.shape_cast %17 : vector<2x1x96xf32> to vector<2x96xf32>
    %cst_18 = arith.constant dense<0.000000e+00> : vector<2x96xf32>
    %19 = tpu.matmul %16, %14, %cst_18 {dimension_numbers = #tpu.dot_dimension_numbers<[1], [0], [0], [1], [0, 0, 1, 1], [], []>} : vector<2x32xf32>, vector<32x96xf32>, vector<2x96xf32> -> vector<2x96xf32>
    %20 = vector.broadcast %15 : vector<1x96xf32> to vector<2x96xf32>
    %21 = arith.addf %19, %20 : vector<2x96xf32>
    %22 = vector.extract_strided_slice %18 {offsets = [0, 0], sizes = [2, 32], strides = [1, 1]} : vector<2x96xf32> to vector<2x32xf32>
    %23 = vector.extract_strided_slice %21 {offsets = [0, 0], sizes = [2, 32], strides = [1, 1]} : vector<2x96xf32> to vector<2x32xf32>
    %24 = arith.addf %22, %23 : vector<2x32xf32>
    %cst_19 = arith.constant 5.000000e-01 : f32
    %25 = vector.broadcast %cst_19 : f32 to vector<2x32xf32>
    %26 = arith.mulf %25, %24 : vector<2x32xf32>
    %27 = math.tanh %26 : vector<2x32xf32>
    %cst_20 = arith.constant 1.000000e+00 : f32
    %28 = vector.broadcast %cst_20 : f32 to vector<2x32xf32>
    %29 = arith.addf %27, %28 : vector<2x32xf32>
    %cst_21 = arith.constant 5.000000e-01 : f32
    %30 = vector.broadcast %cst_21 : f32 to vector<2x32xf32>
    %31 = arith.mulf %30, %29 : vector<2x32xf32>
    %32 = vector.extract_strided_slice %18 {offsets = [0, 32], sizes = [2, 32], strides = [1, 1]} : vector<2x96xf32> to vector<2x32xf32>
    %33 = vector.extract_strided_slice %21 {offsets = [0, 32], sizes = [2, 32], strides = [1, 1]} : vector<2x96xf32> to vector<2x32xf32>
    %34 = arith.addf %32, %33 : vector<2x32xf32>
    %cst_22 = arith.constant 5.000000e-01 : f32
    %35 = vector.broadcast %cst_22 : f32 to vector<2x32xf32>
    %36 = arith.mulf %35, %34 : vector<2x32xf32>
    %37 = math.tanh %36 : vector<2x32xf32>
    %cst_23 = arith.constant 1.000000e+00 : f32
    %38 = vector.broadcast %cst_23 : f32 to vector<2x32xf32>
    %39 = arith.addf %37, %38 : vector<2x32xf32>
    %cst_24 = arith.constant 5.000000e-01 : f32
    %40 = vector.broadcast %cst_24 : f32 to vector<2x32xf32>
    %41 = arith.mulf %40, %39 : vector<2x32xf32>
    %42 = vector.extract_strided_slice %18 {offsets = [0, 64], sizes = [2, 32], strides = [1, 1]} : vector<2x96xf32> to vector<2x32xf32>
    %43 = vector.extract_strided_slice %21 {offsets = [0, 64], sizes = [2, 32], strides = [1, 1]} : vector<2x96xf32> to vector<2x32xf32>
    %44 = arith.mulf %31, %43 : vector<2x32xf32>
    %45 = arith.addf %42, %44 : vector<2x32xf32>
    %46 = math.tanh %45 : vector<2x32xf32>
    %cst_25 = arith.constant 1.000000e+00 : f32
    %47 = vector.broadcast %cst_25 : f32 to vector<2x32xf32>
    %48 = arith.subf %47, %41 : vector<2x32xf32>
    %49 = arith.mulf %48, %46 : vector<2x32xf32>
    %50 = arith.mulf %41, %16 : vector<2x32xf32>
    %51 = arith.addf %49, %50 : vector<2x32xf32>
    %c0_26 = arith.constant 0 : index
    %c1_27 = arith.constant 1 : index
    %c0_28 = arith.constant 0 : index
    %52 = vector.load %arg9[%c0_26, %c1_27, %c0_28] : memref<2x8x96xf32, #tpu.memory_space<vmem>>, vector<2x1x96xf32>
    %53 = vector.shape_cast %52 : vector<2x1x96xf32> to vector<2x96xf32>
    %cst_29 = arith.constant dense<0.000000e+00> : vector<2x96xf32>
    %54 = tpu.matmul %51, %14, %cst_29 {dimension_numbers = #tpu.dot_dimension_numbers<[1], [0], [0], [1], [0, 0, 1, 1], [], []>} : vector<2x32xf32>, vector<32x96xf32>, vector<2x96xf32> -> vector<2x96xf32>
    %55 = vector.broadcast %15 : vector<1x96xf32> to vector<2x96xf32>
    %56 = arith.addf %54, %55 : vector<2x96xf32>
    %57 = vector.extract_strided_slice %53 {offsets = [0, 0], sizes = [2, 32], strides = [1, 1]} : vector<2x96xf32> to vector<2x32xf32>
    %58 = vector.extract_strided_slice %56 {offsets = [0, 0], sizes = [2, 32], strides = [1, 1]} : vector<2x96xf32> to vector<2x32xf32>
    %59 = arith.addf %57, %58 : vector<2x32xf32>
    %cst_30 = arith.constant 5.000000e-01 : f32
    %60 = vector.broadcast %cst_30 : f32 to vector<2x32xf32>
    %61 = arith.mulf %60, %59 : vector<2x32xf32>
    %62 = math.tanh %61 : vector<2x32xf32>
    %cst_31 = arith.constant 1.000000e+00 : f32
    %63 = vector.broadcast %cst_31 : f32 to vector<2x32xf32>
    %64 = arith.addf %62, %63 : vector<2x32xf32>
    %cst_32 = arith.constant 5.000000e-01 : f32
    %65 = vector.broadcast %cst_32 : f32 to vector<2x32xf32>
    %66 = arith.mulf %65, %64 : vector<2x32xf32>
    %67 = vector.extract_strided_slice %53 {offsets = [0, 32], sizes = [2, 32], strides = [1, 1]} : vector<2x96xf32> to vector<2x32xf32>
    %68 = vector.extract_strided_slice %56 {offsets = [0, 32], sizes = [2, 32], strides = [1, 1]} : vector<2x96xf32> to vector<2x32xf32>
    %69 = arith.addf %67, %68 : vector<2x32xf32>
    %cst_33 = arith.constant 5.000000e-01 : f32
    %70 = vector.broadcast %cst_33 : f32 to vector<2x32xf32>
    %71 = arith.mulf %70, %69 : vector<2x32xf32>
    %72 = math.tanh %71 : vector<2x32xf32>
    %cst_34 = arith.constant 1.000000e+00 : f32
    %73 = vector.broadcast %cst_34 : f32 to vector<2x32xf32>
    %74 = arith.addf %72, %73 : vector<2x32xf32>
    %cst_35 = arith.constant 5.000000e-01 : f32
    %75 = vector.broadcast %cst_35 : f32 to vector<2x32xf32>
    %76 = arith.mulf %75, %74 : vector<2x32xf32>
    %77 = vector.extract_strided_slice %53 {offsets = [0, 64], sizes = [2, 32], strides = [1, 1]} : vector<2x96xf32> to vector<2x32xf32>
    %78 = vector.extract_strided_slice %56 {offsets = [0, 64], sizes = [2, 32], strides = [1, 1]} : vector<2x96xf32> to vector<2x32xf32>
    %79 = arith.mulf %66, %78 : vector<2x32xf32>
    %80 = arith.addf %77, %79 : vector<2x32xf32>
    %81 = math.tanh %80 : vector<2x32xf32>
    %cst_36 = arith.constant 1.000000e+00 : f32
    %82 = vector.broadcast %cst_36 : f32 to vector<2x32xf32>
    %83 = arith.subf %82, %76 : vector<2x32xf32>
    %84 = arith.mulf %83, %81 : vector<2x32xf32>
    %85 = arith.mulf %76, %51 : vector<2x32xf32>
    %86 = arith.addf %84, %85 : vector<2x32xf32>
    %c0_37 = arith.constant 0 : index
    %c2 = arith.constant 2 : index
    %c0_38 = arith.constant 0 : index
    %87 = vector.load %arg9[%c0_37, %c2, %c0_38] : memref<2x8x96xf32, #tpu.memory_space<vmem>>, vector<2x1x96xf32>
    %88 = vector.shape_cast %87 : vector<2x1x96xf32> to vector<2x96xf32>
    %cst_39 = arith.constant dense<0.000000e+00> : vector<2x96xf32>
    %89 = tpu.matmul %86, %14, %cst_39 {dimension_numbers = #tpu.dot_dimension_numbers<[1], [0], [0], [1], [0, 0, 1, 1], [], []>} : vector<2x32xf32>, vector<32x96xf32>, vector<2x96xf32> -> vector<2x96xf32>
    %90 = vector.broadcast %15 : vector<1x96xf32> to vector<2x96xf32>
    %91 = arith.addf %89, %90 : vector<2x96xf32>
    %92 = vector.extract_strided_slice %88 {offsets = [0, 0], sizes = [2, 32], strides = [1, 1]} : vector<2x96xf32> to vector<2x32xf32>
    %93 = vector.extract_strided_slice %91 {offsets = [0, 0], sizes = [2, 32], strides = [1, 1]} : vector<2x96xf32> to vector<2x32xf32>
    %94 = arith.addf %92, %93 : vector<2x32xf32>
    %cst_40 = arith.constant 5.000000e-01 : f32
    %95 = vector.broadcast %cst_40 : f32 to vector<2x32xf32>
    %96 = arith.mulf %95, %94 : vector<2x32xf32>
    %97 = math.tanh %96 : vector<2x32xf32>
    %cst_41 = arith.constant 1.000000e+00 : f32
    %98 = vector.broadcast %cst_41 : f32 to vector<2x32xf32>
    %99 = arith.addf %97, %98 : vector<2x32xf32>
    %cst_42 = arith.constant 5.000000e-01 : f32
    %100 = vector.broadcast %cst_42 : f32 to vector<2x32xf32>
    %101 = arith.mulf %100, %99 : vector<2x32xf32>
    %102 = vector.extract_strided_slice %88 {offsets = [0, 32], sizes = [2, 32], strides = [1, 1]} : vector<2x96xf32> to vector<2x32xf32>
    %103 = vector.extract_strided_slice %91 {offsets = [0, 32], sizes = [2, 32], strides = [1, 1]} : vector<2x96xf32> to vector<2x32xf32>
    %104 = arith.addf %102, %103 : vector<2x32xf32>
    %cst_43 = arith.constant 5.000000e-01 : f32
    %105 = vector.broadcast %cst_43 : f32 to vector<2x32xf32>
    %106 = arith.mulf %105, %104 : vector<2x32xf32>
    %107 = math.tanh %106 : vector<2x32xf32>
    %cst_44 = arith.constant 1.000000e+00 : f32
    %108 = vector.broadcast %cst_44 : f32 to vector<2x32xf32>
    %109 = arith.addf %107, %108 : vector<2x32xf32>
    %cst_45 = arith.constant 5.000000e-01 : f32
    %110 = vector.broadcast %cst_45 : f32 to vector<2x32xf32>
    %111 = arith.mulf %110, %109 : vector<2x32xf32>
    %112 = vector.extract_strided_slice %88 {offsets = [0, 64], sizes = [2, 32], strides = [1, 1]} : vector<2x96xf32> to vector<2x32xf32>
    %113 = vector.extract_strided_slice %91 {offsets = [0, 64], sizes = [2, 32], strides = [1, 1]} : vector<2x96xf32> to vector<2x32xf32>
    %114 = arith.mulf %101, %113 : vector<2x32xf32>
    %115 = arith.addf %112, %114 : vector<2x32xf32>
    %116 = math.tanh %115 : vector<2x32xf32>
    %cst_46 = arith.constant 1.000000e+00 : f32
    %117 = vector.broadcast %cst_46 : f32 to vector<2x32xf32>
    %118 = arith.subf %117, %111 : vector<2x32xf32>
    %119 = arith.mulf %118, %116 : vector<2x32xf32>
    %120 = arith.mulf %111, %86 : vector<2x32xf32>
    %121 = arith.addf %119, %120 : vector<2x32xf32>
    %c0_47 = arith.constant 0 : index
    %c3 = arith.constant 3 : index
    %c0_48 = arith.constant 0 : index
    %122 = vector.load %arg9[%c0_47, %c3, %c0_48] : memref<2x8x96xf32, #tpu.memory_space<vmem>>, vector<2x1x96xf32>
    %123 = vector.shape_cast %122 : vector<2x1x96xf32> to vector<2x96xf32>
    %cst_49 = arith.constant dense<0.000000e+00> : vector<2x96xf32>
    %124 = tpu.matmul %121, %14, %cst_49 {dimension_numbers = #tpu.dot_dimension_numbers<[1], [0], [0], [1], [0, 0, 1, 1], [], []>} : vector<2x32xf32>, vector<32x96xf32>, vector<2x96xf32> -> vector<2x96xf32>
    %125 = vector.broadcast %15 : vector<1x96xf32> to vector<2x96xf32>
    %126 = arith.addf %124, %125 : vector<2x96xf32>
    %127 = vector.extract_strided_slice %123 {offsets = [0, 0], sizes = [2, 32], strides = [1, 1]} : vector<2x96xf32> to vector<2x32xf32>
    %128 = vector.extract_strided_slice %126 {offsets = [0, 0], sizes = [2, 32], strides = [1, 1]} : vector<2x96xf32> to vector<2x32xf32>
    %129 = arith.addf %127, %128 : vector<2x32xf32>
    %cst_50 = arith.constant 5.000000e-01 : f32
    %130 = vector.broadcast %cst_50 : f32 to vector<2x32xf32>
    %131 = arith.mulf %130, %129 : vector<2x32xf32>
    %132 = math.tanh %131 : vector<2x32xf32>
    %cst_51 = arith.constant 1.000000e+00 : f32
    %133 = vector.broadcast %cst_51 : f32 to vector<2x32xf32>
    %134 = arith.addf %132, %133 : vector<2x32xf32>
    %cst_52 = arith.constant 5.000000e-01 : f32
    %135 = vector.broadcast %cst_52 : f32 to vector<2x32xf32>
    %136 = arith.mulf %135, %134 : vector<2x32xf32>
    %137 = vector.extract_strided_slice %123 {offsets = [0, 32], sizes = [2, 32], strides = [1, 1]} : vector<2x96xf32> to vector<2x32xf32>
    %138 = vector.extract_strided_slice %126 {offsets = [0, 32], sizes = [2, 32], strides = [1, 1]} : vector<2x96xf32> to vector<2x32xf32>
    %139 = arith.addf %137, %138 : vector<2x32xf32>
    %cst_53 = arith.constant 5.000000e-01 : f32
    %140 = vector.broadcast %cst_53 : f32 to vector<2x32xf32>
    %141 = arith.mulf %140, %139 : vector<2x32xf32>
    %142 = math.tanh %141 : vector<2x32xf32>
    %cst_54 = arith.constant 1.000000e+00 : f32
    %143 = vector.broadcast %cst_54 : f32 to vector<2x32xf32>
    %144 = arith.addf %142, %143 : vector<2x32xf32>
    %cst_55 = arith.constant 5.000000e-01 : f32
    %145 = vector.broadcast %cst_55 : f32 to vector<2x32xf32>
    %146 = arith.mulf %145, %144 : vector<2x32xf32>
    %147 = vector.extract_strided_slice %123 {offsets = [0, 64], sizes = [2, 32], strides = [1, 1]} : vector<2x96xf32> to vector<2x32xf32>
    %148 = vector.extract_strided_slice %126 {offsets = [0, 64], sizes = [2, 32], strides = [1, 1]} : vector<2x96xf32> to vector<2x32xf32>
    %149 = arith.mulf %136, %148 : vector<2x32xf32>
    %150 = arith.addf %147, %149 : vector<2x32xf32>
    %151 = math.tanh %150 : vector<2x32xf32>
    %cst_56 = arith.constant 1.000000e+00 : f32
    %152 = vector.broadcast %cst_56 : f32 to vector<2x32xf32>
    %153 = arith.subf %152, %146 : vector<2x32xf32>
    %154 = arith.mulf %153, %151 : vector<2x32xf32>
    %155 = arith.mulf %146, %121 : vector<2x32xf32>
    %156 = arith.addf %154, %155 : vector<2x32xf32>
    %c0_57 = arith.constant 0 : index
    %c4 = arith.constant 4 : index
    %c0_58 = arith.constant 0 : index
    %157 = vector.load %arg9[%c0_57, %c4, %c0_58] : memref<2x8x96xf32, #tpu.memory_space<vmem>>, vector<2x1x96xf32>
    %158 = vector.shape_cast %157 : vector<2x1x96xf32> to vector<2x96xf32>
    %cst_59 = arith.constant dense<0.000000e+00> : vector<2x96xf32>
    %159 = tpu.matmul %156, %14, %cst_59 {dimension_numbers = #tpu.dot_dimension_numbers<[1], [0], [0], [1], [0, 0, 1, 1], [], []>} : vector<2x32xf32>, vector<32x96xf32>, vector<2x96xf32> -> vector<2x96xf32>
    %160 = vector.broadcast %15 : vector<1x96xf32> to vector<2x96xf32>
    %161 = arith.addf %159, %160 : vector<2x96xf32>
    %162 = vector.extract_strided_slice %158 {offsets = [0, 0], sizes = [2, 32], strides = [1, 1]} : vector<2x96xf32> to vector<2x32xf32>
    %163 = vector.extract_strided_slice %161 {offsets = [0, 0], sizes = [2, 32], strides = [1, 1]} : vector<2x96xf32> to vector<2x32xf32>
    %164 = arith.addf %162, %163 : vector<2x32xf32>
    %cst_60 = arith.constant 5.000000e-01 : f32
    %165 = vector.broadcast %cst_60 : f32 to vector<2x32xf32>
    %166 = arith.mulf %165, %164 : vector<2x32xf32>
    %167 = math.tanh %166 : vector<2x32xf32>
    %cst_61 = arith.constant 1.000000e+00 : f32
    %168 = vector.broadcast %cst_61 : f32 to vector<2x32xf32>
    %169 = arith.addf %167, %168 : vector<2x32xf32>
    %cst_62 = arith.constant 5.000000e-01 : f32
    %170 = vector.broadcast %cst_62 : f32 to vector<2x32xf32>
    %171 = arith.mulf %170, %169 : vector<2x32xf32>
    %172 = vector.extract_strided_slice %158 {offsets = [0, 32], sizes = [2, 32], strides = [1, 1]} : vector<2x96xf32> to vector<2x32xf32>
    %173 = vector.extract_strided_slice %161 {offsets = [0, 32], sizes = [2, 32], strides = [1, 1]} : vector<2x96xf32> to vector<2x32xf32>
    %174 = arith.addf %172, %173 : vector<2x32xf32>
    %cst_63 = arith.constant 5.000000e-01 : f32
    %175 = vector.broadcast %cst_63 : f32 to vector<2x32xf32>
    %176 = arith.mulf %175, %174 : vector<2x32xf32>
    %177 = math.tanh %176 : vector<2x32xf32>
    %cst_64 = arith.constant 1.000000e+00 : f32
    %178 = vector.broadcast %cst_64 : f32 to vector<2x32xf32>
    %179 = arith.addf %177, %178 : vector<2x32xf32>
    %cst_65 = arith.constant 5.000000e-01 : f32
    %180 = vector.broadcast %cst_65 : f32 to vector<2x32xf32>
    %181 = arith.mulf %180, %179 : vector<2x32xf32>
    %182 = vector.extract_strided_slice %158 {offsets = [0, 64], sizes = [2, 32], strides = [1, 1]} : vector<2x96xf32> to vector<2x32xf32>
    %183 = vector.extract_strided_slice %161 {offsets = [0, 64], sizes = [2, 32], strides = [1, 1]} : vector<2x96xf32> to vector<2x32xf32>
    %184 = arith.mulf %171, %183 : vector<2x32xf32>
    %185 = arith.addf %182, %184 : vector<2x32xf32>
    %186 = math.tanh %185 : vector<2x32xf32>
    %cst_66 = arith.constant 1.000000e+00 : f32
    %187 = vector.broadcast %cst_66 : f32 to vector<2x32xf32>
    %188 = arith.subf %187, %181 : vector<2x32xf32>
    %189 = arith.mulf %188, %186 : vector<2x32xf32>
    %190 = arith.mulf %181, %156 : vector<2x32xf32>
    %191 = arith.addf %189, %190 : vector<2x32xf32>
    %c0_67 = arith.constant 0 : index
    %c5 = arith.constant 5 : index
    %c0_68 = arith.constant 0 : index
    %192 = vector.load %arg9[%c0_67, %c5, %c0_68] : memref<2x8x96xf32, #tpu.memory_space<vmem>>, vector<2x1x96xf32>
    %193 = vector.shape_cast %192 : vector<2x1x96xf32> to vector<2x96xf32>
    %cst_69 = arith.constant dense<0.000000e+00> : vector<2x96xf32>
    %194 = tpu.matmul %191, %14, %cst_69 {dimension_numbers = #tpu.dot_dimension_numbers<[1], [0], [0], [1], [0, 0, 1, 1], [], []>} : vector<2x32xf32>, vector<32x96xf32>, vector<2x96xf32> -> vector<2x96xf32>
    %195 = vector.broadcast %15 : vector<1x96xf32> to vector<2x96xf32>
    %196 = arith.addf %194, %195 : vector<2x96xf32>
    %197 = vector.extract_strided_slice %193 {offsets = [0, 0], sizes = [2, 32], strides = [1, 1]} : vector<2x96xf32> to vector<2x32xf32>
    %198 = vector.extract_strided_slice %196 {offsets = [0, 0], sizes = [2, 32], strides = [1, 1]} : vector<2x96xf32> to vector<2x32xf32>
    %199 = arith.addf %197, %198 : vector<2x32xf32>
    %cst_70 = arith.constant 5.000000e-01 : f32
    %200 = vector.broadcast %cst_70 : f32 to vector<2x32xf32>
    %201 = arith.mulf %200, %199 : vector<2x32xf32>
    %202 = math.tanh %201 : vector<2x32xf32>
    %cst_71 = arith.constant 1.000000e+00 : f32
    %203 = vector.broadcast %cst_71 : f32 to vector<2x32xf32>
    %204 = arith.addf %202, %203 : vector<2x32xf32>
    %cst_72 = arith.constant 5.000000e-01 : f32
    %205 = vector.broadcast %cst_72 : f32 to vector<2x32xf32>
    %206 = arith.mulf %205, %204 : vector<2x32xf32>
    %207 = vector.extract_strided_slice %193 {offsets = [0, 32], sizes = [2, 32], strides = [1, 1]} : vector<2x96xf32> to vector<2x32xf32>
    %208 = vector.extract_strided_slice %196 {offsets = [0, 32], sizes = [2, 32], strides = [1, 1]} : vector<2x96xf32> to vector<2x32xf32>
    %209 = arith.addf %207, %208 : vector<2x32xf32>
    %cst_73 = arith.constant 5.000000e-01 : f32
    %210 = vector.broadcast %cst_73 : f32 to vector<2x32xf32>
    %211 = arith.mulf %210, %209 : vector<2x32xf32>
    %212 = math.tanh %211 : vector<2x32xf32>
    %cst_74 = arith.constant 1.000000e+00 : f32
    %213 = vector.broadcast %cst_74 : f32 to vector<2x32xf32>
    %214 = arith.addf %212, %213 : vector<2x32xf32>
    %cst_75 = arith.constant 5.000000e-01 : f32
    %215 = vector.broadcast %cst_75 : f32 to vector<2x32xf32>
    %216 = arith.mulf %215, %214 : vector<2x32xf32>
    %217 = vector.extract_strided_slice %193 {offsets = [0, 64], sizes = [2, 32], strides = [1, 1]} : vector<2x96xf32> to vector<2x32xf32>
    %218 = vector.extract_strided_slice %196 {offsets = [0, 64], sizes = [2, 32], strides = [1, 1]} : vector<2x96xf32> to vector<2x32xf32>
    %219 = arith.mulf %206, %218 : vector<2x32xf32>
    %220 = arith.addf %217, %219 : vector<2x32xf32>
    %221 = math.tanh %220 : vector<2x32xf32>
    %cst_76 = arith.constant 1.000000e+00 : f32
    %222 = vector.broadcast %cst_76 : f32 to vector<2x32xf32>
    %223 = arith.subf %222, %216 : vector<2x32xf32>
    %224 = arith.mulf %223, %221 : vector<2x32xf32>
    %225 = arith.mulf %216, %191 : vector<2x32xf32>
    %226 = arith.addf %224, %225 : vector<2x32xf32>
    %c0_77 = arith.constant 0 : index
    %c6 = arith.constant 6 : index
    %c0_78 = arith.constant 0 : index
    %227 = vector.load %arg9[%c0_77, %c6, %c0_78] : memref<2x8x96xf32, #tpu.memory_space<vmem>>, vector<2x1x96xf32>
    %228 = vector.shape_cast %227 : vector<2x1x96xf32> to vector<2x96xf32>
    %cst_79 = arith.constant dense<0.000000e+00> : vector<2x96xf32>
    %229 = tpu.matmul %226, %14, %cst_79 {dimension_numbers = #tpu.dot_dimension_numbers<[1], [0], [0], [1], [0, 0, 1, 1], [], []>} : vector<2x32xf32>, vector<32x96xf32>, vector<2x96xf32> -> vector<2x96xf32>
    %230 = vector.broadcast %15 : vector<1x96xf32> to vector<2x96xf32>
    %231 = arith.addf %229, %230 : vector<2x96xf32>
    %232 = vector.extract_strided_slice %228 {offsets = [0, 0], sizes = [2, 32], strides = [1, 1]} : vector<2x96xf32> to vector<2x32xf32>
    %233 = vector.extract_strided_slice %231 {offsets = [0, 0], sizes = [2, 32], strides = [1, 1]} : vector<2x96xf32> to vector<2x32xf32>
    %234 = arith.addf %232, %233 : vector<2x32xf32>
    %cst_80 = arith.constant 5.000000e-01 : f32
    %235 = vector.broadcast %cst_80 : f32 to vector<2x32xf32>
    %236 = arith.mulf %235, %234 : vector<2x32xf32>
    %237 = math.tanh %236 : vector<2x32xf32>
    %cst_81 = arith.constant 1.000000e+00 : f32
    %238 = vector.broadcast %cst_81 : f32 to vector<2x32xf32>
    %239 = arith.addf %237, %238 : vector<2x32xf32>
    %cst_82 = arith.constant 5.000000e-01 : f32
    %240 = vector.broadcast %cst_82 : f32 to vector<2x32xf32>
    %241 = arith.mulf %240, %239 : vector<2x32xf32>
    %242 = vector.extract_strided_slice %228 {offsets = [0, 32], sizes = [2, 32], strides = [1, 1]} : vector<2x96xf32> to vector<2x32xf32>
    %243 = vector.extract_strided_slice %231 {offsets = [0, 32], sizes = [2, 32], strides = [1, 1]} : vector<2x96xf32> to vector<2x32xf32>
    %244 = arith.addf %242, %243 : vector<2x32xf32>
    %cst_83 = arith.constant 5.000000e-01 : f32
    %245 = vector.broadcast %cst_83 : f32 to vector<2x32xf32>
    %246 = arith.mulf %245, %244 : vector<2x32xf32>
    %247 = math.tanh %246 : vector<2x32xf32>
    %cst_84 = arith.constant 1.000000e+00 : f32
    %248 = vector.broadcast %cst_84 : f32 to vector<2x32xf32>
    %249 = arith.addf %247, %248 : vector<2x32xf32>
    %cst_85 = arith.constant 5.000000e-01 : f32
    %250 = vector.broadcast %cst_85 : f32 to vector<2x32xf32>
    %251 = arith.mulf %250, %249 : vector<2x32xf32>
    %252 = vector.extract_strided_slice %228 {offsets = [0, 64], sizes = [2, 32], strides = [1, 1]} : vector<2x96xf32> to vector<2x32xf32>
    %253 = vector.extract_strided_slice %231 {offsets = [0, 64], sizes = [2, 32], strides = [1, 1]} : vector<2x96xf32> to vector<2x32xf32>
    %254 = arith.mulf %241, %253 : vector<2x32xf32>
    %255 = arith.addf %252, %254 : vector<2x32xf32>
    %256 = math.tanh %255 : vector<2x32xf32>
    %cst_86 = arith.constant 1.000000e+00 : f32
    %257 = vector.broadcast %cst_86 : f32 to vector<2x32xf32>
    %258 = arith.subf %257, %251 : vector<2x32xf32>
    %259 = arith.mulf %258, %256 : vector<2x32xf32>
    %260 = arith.mulf %251, %226 : vector<2x32xf32>
    %261 = arith.addf %259, %260 : vector<2x32xf32>
    %c0_87 = arith.constant 0 : index
    %c7 = arith.constant 7 : index
    %c0_88 = arith.constant 0 : index
    %262 = vector.load %arg9[%c0_87, %c7, %c0_88] : memref<2x8x96xf32, #tpu.memory_space<vmem>>, vector<2x1x96xf32>
    %263 = vector.shape_cast %262 : vector<2x1x96xf32> to vector<2x96xf32>
    %cst_89 = arith.constant dense<0.000000e+00> : vector<2x96xf32>
    %264 = tpu.matmul %261, %14, %cst_89 {dimension_numbers = #tpu.dot_dimension_numbers<[1], [0], [0], [1], [0, 0, 1, 1], [], []>} : vector<2x32xf32>, vector<32x96xf32>, vector<2x96xf32> -> vector<2x96xf32>
    %265 = vector.broadcast %15 : vector<1x96xf32> to vector<2x96xf32>
    %266 = arith.addf %264, %265 : vector<2x96xf32>
    %267 = vector.extract_strided_slice %263 {offsets = [0, 0], sizes = [2, 32], strides = [1, 1]} : vector<2x96xf32> to vector<2x32xf32>
    %268 = vector.extract_strided_slice %266 {offsets = [0, 0], sizes = [2, 32], strides = [1, 1]} : vector<2x96xf32> to vector<2x32xf32>
    %269 = arith.addf %267, %268 : vector<2x32xf32>
    %cst_90 = arith.constant 5.000000e-01 : f32
    %270 = vector.broadcast %cst_90 : f32 to vector<2x32xf32>
    %271 = arith.mulf %270, %269 : vector<2x32xf32>
    %272 = math.tanh %271 : vector<2x32xf32>
    %cst_91 = arith.constant 1.000000e+00 : f32
    %273 = vector.broadcast %cst_91 : f32 to vector<2x32xf32>
    %274 = arith.addf %272, %273 : vector<2x32xf32>
    %cst_92 = arith.constant 5.000000e-01 : f32
    %275 = vector.broadcast %cst_92 : f32 to vector<2x32xf32>
    %276 = arith.mulf %275, %274 : vector<2x32xf32>
    %277 = vector.extract_strided_slice %263 {offsets = [0, 32], sizes = [2, 32], strides = [1, 1]} : vector<2x96xf32> to vector<2x32xf32>
    %278 = vector.extract_strided_slice %266 {offsets = [0, 32], sizes = [2, 32], strides = [1, 1]} : vector<2x96xf32> to vector<2x32xf32>
    %279 = arith.addf %277, %278 : vector<2x32xf32>
    %cst_93 = arith.constant 5.000000e-01 : f32
    %280 = vector.broadcast %cst_93 : f32 to vector<2x32xf32>
    %281 = arith.mulf %280, %279 : vector<2x32xf32>
    %282 = math.tanh %281 : vector<2x32xf32>
    %cst_94 = arith.constant 1.000000e+00 : f32
    %283 = vector.broadcast %cst_94 : f32 to vector<2x32xf32>
    %284 = arith.addf %282, %283 : vector<2x32xf32>
    %cst_95 = arith.constant 5.000000e-01 : f32
    %285 = vector.broadcast %cst_95 : f32 to vector<2x32xf32>
    %286 = arith.mulf %285, %284 : vector<2x32xf32>
    %287 = vector.extract_strided_slice %263 {offsets = [0, 64], sizes = [2, 32], strides = [1, 1]} : vector<2x96xf32> to vector<2x32xf32>
    %288 = vector.extract_strided_slice %266 {offsets = [0, 64], sizes = [2, 32], strides = [1, 1]} : vector<2x96xf32> to vector<2x32xf32>
    %289 = arith.mulf %276, %288 : vector<2x32xf32>
    %290 = arith.addf %287, %289 : vector<2x32xf32>
    %291 = math.tanh %290 : vector<2x32xf32>
    %cst_96 = arith.constant 1.000000e+00 : f32
    %292 = vector.broadcast %cst_96 : f32 to vector<2x32xf32>
    %293 = arith.subf %292, %286 : vector<2x32xf32>
    %294 = arith.mulf %293, %291 : vector<2x32xf32>
    %295 = arith.mulf %286, %261 : vector<2x32xf32>
    %296 = arith.addf %294, %295 : vector<2x32xf32>
    %c0_97 = arith.constant 0 : index
    %c0_98 = arith.constant 0 : index
    %297 = vector.load %arg5[%c0_97, %c0_98] : memref<32x24xf32, #tpu.memory_space<vmem>>, vector<32x24xf32>
    %cst_99 = arith.constant dense<0.000000e+00> : vector<2x24xf32>
    %298 = tpu.matmul %296, %297, %cst_99 {dimension_numbers = #tpu.dot_dimension_numbers<[1], [0], [0], [1], [0, 0, 1, 1], [], []>} : vector<2x32xf32>, vector<32x24xf32>, vector<2x24xf32> -> vector<2x24xf32>
    %c0_100 = arith.constant 0 : index
    %c0_101 = arith.constant 0 : index
    %299 = vector.load %arg6[%c0_100, %c0_101] : memref<1x24xf32, #tpu.memory_space<vmem>>, vector<1x24xf32>
    %300 = vector.broadcast %299 : vector<1x24xf32> to vector<2x24xf32>
    %301 = arith.addf %298, %300 : vector<2x24xf32>
    %302 = vector.extract_strided_slice %301 {offsets = [0, 0], sizes = [2, 8], strides = [1, 1]} : vector<2x24xf32> to vector<2x8xf32>
    %303 = vector.extract_strided_slice %301 {offsets = [0, 8], sizes = [2, 16], strides = [1, 1]} : vector<2x24xf32> to vector<2x16xf32>
    %304 = arith.mulf %302, %302 : vector<2x8xf32>
    %cst_102 = arith.constant dense<0.000000e+00> : vector<2xf32>
    %305 = vector.multi_reduction <add>, %304, %cst_102 [1] : vector<2x8xf32> to vector<2xf32>
    %306 = vector.shape_cast %305 : vector<2xf32> to vector<2x1xf32>
    %307 = math.rsqrt %306 : vector<2x1xf32>
    %cst_103 = arith.constant 3.1622777 : f32
    %308 = vector.broadcast %cst_103 : f32 to vector<2x1xf32>
    %309 = arith.mulf %308, %307 : vector<2x1xf32>
    %310 = vector.broadcast %309 : vector<2x1xf32> to vector<2x8xf32>
    %311 = arith.mulf %302, %310 : vector<2x8xf32>
    %c0_104 = arith.constant 0 : index
    %c0_105 = arith.constant 0 : index
    %312 = vector.load %arg7[%c0_104, %c0_105] : memref<2x8xf32, #tpu.memory_space<vmem>>, vector<2x8xf32>
    tpu.vector_store %arg7[%c0_104, %c0_105], %311 {strides = array<i32>} : memref<2x8xf32, #tpu.memory_space<vmem>>, vector<2x8xf32>,
    %313 = vector.extract_strided_slice %303 {offsets = [0, 0], sizes = [2, 8], strides = [1, 1]} : vector<2x16xf32> to vector<2x8xf32>
    %314 = vector.extract_strided_slice %303 {offsets = [0, 8], sizes = [2, 8], strides = [1, 1]} : vector<2x16xf32> to vector<2x8xf32>
    %315 = arith.mulf %313, %313 : vector<2x8xf32>
    %316 = arith.mulf %314, %314 : vector<2x8xf32>
    %317 = arith.addf %315, %316 : vector<2x8xf32>
    %318 = math.rsqrt %317 : vector<2x8xf32>
    %319 = arith.mulf %313, %318 : vector<2x8xf32>
    %320 = arith.mulf %314, %318 : vector<2x8xf32>
    %321 = tpu.concatenate %319, %320 in 1 : vector<2x8xf32>, vector<2x8xf32> -> vector<2x16xf32>
    %c0_106 = arith.constant 0 : index
    %c0_107 = arith.constant 0 : index
    %322 = vector.load %arg8[%c0_106, %c0_107] : memref<2x16xf32, #tpu.memory_space<vmem>>, vector<2x16xf32>
    tpu.vector_store %arg8[%c0_106, %c0_107], %321 {strides = array<i32>} : memref<2x16xf32, #tpu.memory_space<vmem>>, vector<2x16xf32>,
    return
  }
}

</mosaic_0001>

<bundles_post_ra>
// kernel: tpu_custom_call.1
= control target key start
LH: loop header
LB: loop body
LE: loop exit
PB: predicated region body
PF: predicated region fallthrough
CT: control target
= control target key end

     0   :  { %14 = vsyncpa [#allocation4], 0  ;;  %s1214_s0 = inlined_call_operand.vmem [shape: f32[16,16], index: 0, kind: input, shape index: {}]   ;;  %s1215_s1 = inlined_call_operand.hbm [shape: f32[16,96], index: 1, kind: input, shape index: {}]   ;;  %s1216_s2 = inlined_call_operand.vmem [shape: f32[1,96], index: 2, kind: input, shape index: {}]   ;;  %s1217_s3 = inlined_call_operand.vmem [shape: f32[32,96], index: 3, kind: input, shape index: {}]   ;;  %s1218_s4 = inlined_call_operand.vmem [shape: f32[1,96], index: 4, kind: input, shape index: {}]   ;;  %s1219_s5 = inlined_call_operand.vmem [shape: f32[32,24], index: 5, kind: input, shape index: {}]   ;;  %s1220_s6 = inlined_call_operand.vmem [shape: f32[1,24], index: 6, kind: input, shape index: {}]   ;;  %s1221_s7 = inlined_call_operand.hbm [shape: f32[2,8], index: 7, kind: output, shape index: {0}]   ;;  %s1222_s8 = inlined_call_operand.hbm [shape: f32[2,16], index: 8, kind: output, shape index: {1}]  }
   0x1   :  { %15 = vsyncpa [#allocation5], 0 }
   0x2   :  { %16 = vsyncpa [#allocation8], 0  ;;  %s23_s29 = sshll.u32 %s1215_s1, 4  ;;  %s1021_s30 = smov [#allocation3]   ;;  %s24_s29 = int_to_ptr.hbm [resolvable:$true] %s23_s29 }
   0x3   :  { %s25_s9 = sshll.u32 %s1021_s30, 4  ;;  %s1022_s10 = smov 128   ;;  %s26_s9 = int_to_ptr.vmem [resolvable:$true] %s25_s9 }
   0x4   :  { %s1023_s11 = smov 8  }
   0x5   :  { %31 = dma.hbm_to_vmem [thread:$0]  %s24_s29, 256, %s26_s9, [#allocation4], %s1022_s10, %s1022_s10, %s1023_s11  }
   0x6   :  { %1015 = dma.done.wait [#allocation4], 256  }
   0x7   :  { %1016 = vsyncadd [#allocation4], 4294967040  ;;  %v49_v0 = vld [vmem:[#allocation3 + $0x8] sm:$0xff]  ;;  %v48_v2 = vld [vmem:[#allocation3] sm:$0xff]  ;;  %vm54_vm0 = vcmask 130048   ;;  %v1024_v7 = vmov 0.0  }
   0x8   :  { %v91_v1 = vld [vmem:[%s1217_s3 + $0x18] sm:$0xff]  ;;  %75 = vmatpush.msra.mxu0 %v49_v0  ;;  %v90_v3 = vld [vmem:[%s1217_s3 + $0x10] sm:$0xff]  ;;  %v46_v4 = vld [vmem:[%s1214_s0] sm:$0xff]  ;;  %vm84_vm1 = vcmask 785408   ;;  %s1025_s25 = smov 64   ;;  %vm177_vm2 = vcmask 1041409  }
   0x9   :  { %114 = vmatpush.msra.mxu1 %v91_v1  ;;  %v89_v5 = vld [vmem:[%s1217_s3 + $0x8] sm:$0xff]  ;;  %195 = vmatpush.msra.mxu2 %v91_v1  ;;  %v88_v6 = vld [vmem:[%s1217_s3] sm:$0xff]  ;;  %vm98_vm3 = vcmask 261120   ;;  %vm770_vm4 = vcmask 58368   ;;  %s1027_s13 = smov 120   ;;  %s827_s15 = sshll.u32 %s1221_s7, 4  ;;  %s828_s15 = int_to_ptr.hbm [resolvable:$true] %s827_s15 }
   0xa   :  { %275 = vmatpush.msra.mxu3 %v91_v1  ;;  %76 = vmatpush.msra.mxu0 %v48_v2  ;;  %v47_v8 = vld [vmem:[%s1214_s0 + $0x8] sm:$0xff]  ;;  %v872_v9 = vld [vmem:[%s1216_s2] ss:$0 sm:$0xff]  ;;  %s1026_s2 = smov 96   ;;  %s1029_s16 = smov [#allocation7]   ;;  %vm816_vm11 = vcmask 64512  }
   0xb   :  { %115 = vmatpush.msra.mxu1 %v90_v3  ;;  %853 = vmatmul.msk.f32.vlgmr.msra.gmra.mxu0 %vm54_vm0, %v46_v4  ;;  %v1105_v12 = vld [vmem:[%s1218_s4] ss:$0 sm:$0xff]  ;;  %s836_s17 = sshll.u32 %s1029_s16, 4  ;;  %s838_s20 = sshll.u32 %s1222_s8, 4  ;;  %vm818_vm12 = vcmask 123904   ;;  %s837_s17 = int_to_ptr.vmem [resolvable:$true] %s836_s17  ;;  %s839_s20 = int_to_ptr.hbm [resolvable:$true] %s838_s20 }
   0xc   :  { %196 = vmatpush.msra.mxu2 %v90_v3  ;;  %276 = vmatpush.msra.mxu3 %v90_v3 }
   0xd   :  { %116 = vmatpush.msra.mxu1 %v89_v5  ;;  %595 = vmatpush.msrb.mxu0 %v91_v1 }
   0xe   :  { %197 = vmatpush.msra.mxu2 %v89_v5  ;;  %277 = vmatpush.msra.mxu3 %v89_v5 }
   0xf   :  { %117 = vmatpush.msra.mxu1 %v88_v6  ;;  %596 = vmatpush.msrb.mxu0 %v90_v3 }
  0x10   :  { %118 = vmatmul.f32.vlgmr.msra.gmra.mxu1 %v1024_v7  ;;  %198 = vmatpush.msra.mxu2 %v88_v6 }
  0x11   :  { %278 = vmatpush.msra.mxu3 %v88_v6  ;;  %355 = vmatpush.msrb.mxu1 %v91_v1 }
  0x12   :  { %435 = vmatpush.msrb.mxu2 %v91_v1  ;;  %597 = vmatpush.msrb.mxu0 %v89_v5 }
  0x13   :  { %515 = vmatpush.msrb.mxu3 %v91_v1  ;;  %356 = vmatpush.msrb.mxu1 %v90_v3 }
  0x14   :  { %854 = vmatmul.msk.f32.gmra.mxu0 %vm54_vm0, %v47_v8  ;;  %436 = vmatpush.msrb.mxu2 %v90_v3 }
  0x15   :  { %357 = vmatpush.msrb.mxu1 %v89_v5  ;;  %516 = vmatpush.msrb.mxu3 %v90_v3 }
  0x16   :  { %437 = vmatpush.msrb.mxu2 %v89_v5  ;;  %598 = vmatpush.msrb.mxu0 %v88_v6 }
  0x17   :  { %358 = vmatpush.msrb.mxu1 %v88_v6  ;;  %517 = vmatpush.msrb.mxu3 %v89_v5 }
  0x18   :  { %438 = vmatpush.msrb.mxu2 %v88_v6 }
  0x19   :  { %518 = vmatpush.msrb.mxu3 %v88_v6  ;;  %675 = vmatpush.msra.mxu1 %v91_v1 }
  0x1b   :  { %676 = vmatpush.msra.mxu1 %v90_v3 }
  0x1d   :  { %677 = vmatpush.msra.mxu1 %v89_v5 }
  0x1f   :  { %678 = vmatpush.msra.mxu1 %v88_v6 }
  0x88   :  { %v78_v10 = vpop.f32.mrf.mxu0 }
  0x89   :  { %v79_v11 = vadd.f32 %v872_v9, %v78_v10 }
  0x8b   :  { %85 = vst.msk [vmem:[#allocation2] sm:$0xff] %vm84_vm1, %v79_v11 }
  0x8d   :  { %v119_v13 = vpop.f32.mrf.mxu1 }
  0x8e   :  { %v120_v14 = vadd.f32 %v1105_v12, %v119_v13 }
  0x90   :  { %v123_v15 = vrot.slane %v120_v14, 1 }
  0x91   :  { %v81_v16 = vpop.f32.mrf.mxu0 }
  0x92   :  { %v82_v17 = vadd.f32 %v872_v9, %v81_v16  ;;  %138 = vrot.lane.b32.xlu0 %v123_v15, %s1025_s25  ;;  %v93_v21 = vld [vmem:[#allocation2] sm:$0x1]  ;;  %v172_v56 = vld [vmem:[#allocation2 + $0x1] sm:$0x1] }
  0x93   :  { %v126_v22 = vadd.f32 %v120_v14, %v93_v21 }
  0x94   :  { %87 = vst.msk [vmem:[#allocation2 + $0x8] sm:$0xff] %vm84_vm1, %v82_v17 }
  0x95   :  { %v128_v23 = vmul.f32 0.5, %v126_v22 }
  0x9a   :  { %136 = vrot.lane.b32.xlu0 %v120_v14, %s1025_s25 }
  0x9b   :  { %v94_v18 = vld [vmem:[#allocation2 + $0x8] sm:$0x1]  ;;  %v173_v0 = vld [vmem:[#allocation2 + $0x9] sm:$0x1] }
  0x9c   :  { %v127_v19 = vadd.f32 %v123_v15, %v94_v18 }
  0x9e   :  { %v129_v20 = vmul.f32 0.5, %v127_v19 }
  0xa0   :  { %875 = vtanh.f32 %v129_v20 }
  0xa1   :  { %877 = vtanh.f32 %v128_v23 }
  0xa6   :  { %v876_v24 = vpop.eup %875 }
  0xa7   :  { %v133_v25 = vadd.f32 1.0, %v876_v24  ;;  %v878_v27 = vpop.eup %877 }
  0xa8   :  { %v132_v30 = vadd.f32 1.0, %v878_v27 }
  0xa9   :  { %v135_v26 = vmul.f32 0.5, %v133_v25 }
  0xaa   :  { %v134_v31 = vmul.f32 0.5, %v132_v30 }
  0xab   :  { %v157_v41 = vsub.f32 1.0, %v135_v26  ;;  %v169_v43 = vmul.f32 0.0, %v135_v26 }
  0xac   :  { %v156_v45 = vsub.f32 1.0, %v134_v31  ;;  %v168_v47 = vmul.f32 0.0, %v134_v31 }
 0x104   :  { %v139_v28 = vpop.permute.xlu0 %138 }
 0x105   :  { %v143_v29 = vmul.f32 %v139_v28, %v135_v26 }
 0x107   :  { %148 = vrot.lane.b32.xlu1 %v143_v29, %s1025_s25 }
 0x10c   :  { %v137_v32 = vpop.permute.xlu0 %136 }
 0x10d   :  { %v142_v33 = vmul.f32 %v137_v32, %v134_v31  ;;  %v254_v31 = vld [vmem:[#allocation2 + $0xa] sm:$0x1] }
 0x10f   :  { %146 = vrot.lane.b32.xlu1 %v142_v33, %s1025_s25 }
 0x179   :  { %v149_v34 = vpop.permute.xlu1 %148 }
 0x17a   :  { %v153_v35 = vadd.f32 %v149_v34, %v94_v18 }
 0x17c   :  { %879 = vtanh.f32 %v153_v35 }
 0x181   :  { %v147_v36 = vpop.permute.xlu1 %146 }
 0x182   :  { %v880_v37 = vpop.eup %879  ;;  %v152_v38 = vadd.f32 %v147_v36, %v93_v21  ;;  %v253_v36 = vld [vmem:[#allocation2 + $0x2] sm:$0x1] }
 0x183   :  { %162 = vrot.lane.b32.xlu2 %v880_v37, %s1026_s2 }
 0x184   :  { %881 = vtanh.f32 %v152_v38 }
 0x18a   :  { %v882_v39 = vpop.eup %881 }
 0x18b   :  { %160 = vrot.lane.b32.xlu2 %v882_v39, %s1026_s2 }
 0x1dd   :  { %v163_v40 = vpop.permute.xlu2 %162 }
 0x1de   :  { %v167_v42 = vmul.f32 %v163_v40, %v157_v41 }
 0x1e0   :  { %v171_v44 = vadd.f32 %v169_v43, %v167_v42 }
 0x1e2   :  { %v176_v49 = vrot.slane %v171_v44, 7 }
 0x1e5   :  { %v161_v46 = vpop.permute.xlu2 %160 }
 0x1e6   :  { %v166_v48 = vmul.f32 %v161_v46, %v156_v45 }
 0x1e8   :  { %v170_v50 = vadd.f32 %v168_v47, %v166_v48 }
 0x1ea   :  { %v178_v51 = vsel %vm177_vm2, %v176_v49, %v170_v50 }
 0x1eb   :  { %179 = vrot.lane.b32.xlu0 %v178_v51, %s1026_s2 }
 0x25d   :  { %v180_v52 = vpop.permute.xlu0 %179 }
 0x25e   :  { %855 = vmatmul.msk.f32.vlgmr.msra.gmra.mxu2 %vm98_vm3, %v180_v52 }
 0x2e1   :  { %v200_v53 = vpop.f32.mrf.mxu2 }
 0x2e2   :  { %v201_v54 = vadd.f32 %v1105_v12, %v200_v53 }
 0x2e4   :  { %217 = vrot.lane.b32.xlu2 %v201_v54, %s1025_s25  ;;  %v204_v55 = vrot.slane %v201_v54, 1  ;;  %v207_v57 = vadd.f32 %v201_v54, %v172_v56 }
 0x2e6   :  { %219 = vrot.lane.b32.xlu1 %v204_v55, %s1025_s25  ;;  %v209_v58 = vmul.f32 0.5, %v207_v57  ;;  %v208_v1 = vadd.f32 %v204_v55, %v173_v0 }
 0x2e8   :  { %883 = vtanh.f32 %v209_v58  ;;  %v210_v2 = vmul.f32 0.5, %v208_v1 }
 0x2ea   :  { %885 = vtanh.f32 %v210_v2 }
 0x2ee   :  { %v884_v59 = vpop.eup %883 }
 0x2ef   :  { %v213_v60 = vadd.f32 1.0, %v884_v59 }
 0x2f0   :  { %v886_v3 = vpop.eup %885 }
 0x2f1   :  { %v215_v61 = vmul.f32 0.5, %v213_v60  ;;  %v214_v4 = vadd.f32 1.0, %v886_v3 }
 0x2f3   :  { %v216_v5 = vmul.f32 0.5, %v214_v4  ;;  %v237_v16 = vsub.f32 1.0, %v215_v61  ;;  %v249_v22 = vmul.f32 %v215_v61, %v170_v50 }
 0x2f5   :  { %v238_v17 = vsub.f32 1.0, %v216_v5  ;;  %v250_v20 = vmul.f32 %v216_v5, %v171_v44 }
 0x33e   :  { %v218_v62 = vpop.permute.xlu2 %217 }
 0x33f   :  { %v223_v63 = vmul.f32 %v218_v62, %v215_v61 }
 0x341   :  { %227 = vrot.lane.b32.xlu1 %v223_v63, %s1025_s25 }
 0x358   :  { %v220_v6 = vpop.permute.xlu1 %219 }
 0x359   :  { %v224_v7 = vmul.f32 %v220_v6, %v216_v5  ;;  %v333_v5 = vld [vmem:[#allocation2 + $0x3] sm:$0x1] }
 0x35b   :  { %229 = vrot.lane.b32.xlu0 %v224_v7, %s1025_s25  ;;  %v334_v7 = vld [vmem:[#allocation2 + $0xb] sm:$0x1] }
 0x3b3   :  { %v228_v8 = vpop.permute.xlu1 %227 }
 0x3b4   :  { %v233_v9 = vadd.f32 %v228_v8, %v172_v56 }
 0x3b6   :  { %887 = vtanh.f32 %v233_v9 }
 0x3bc   :  { %v888_v10 = vpop.eup %887 }
 0x3bd   :  { %241 = vrot.lane.b32.xlu0 %v888_v10, %s1026_s2 }
 0x3cd   :  { %v230_v11 = vpop.permute.xlu0 %229 }
 0x3ce   :  { %v234_v13 = vadd.f32 %v230_v11, %v173_v0 }
 0x3d0   :  { %889 = vtanh.f32 %v234_v13 }
 0x3d6   :  { %v890_v14 = vpop.eup %889 }
 0x3d7   :  { %243 = vrot.lane.b32.xlu2 %v890_v14, %s1026_s2 }
 0x42f   :  { %v242_v15 = vpop.permute.xlu0 %241 }
 0x430   :  { %v247_v19 = vmul.f32 %v242_v15, %v237_v16 }
 0x431   :  { %v244_v18 = vpop.permute.xlu2 %243 }
 0x432   :  { %v248_v21 = vmul.f32 %v244_v18, %v238_v17  ;;  %v251_v24 = vadd.f32 %v249_v22, %v247_v19 }
 0x434   :  { %v252_v23 = vadd.f32 %v250_v20, %v248_v21 }
 0x436   :  { %v257_v25 = vrot.slane %v252_v23, 7 }
 0x438   :  { %v258_v26 = vsel %vm177_vm2, %v257_v25, %v251_v24 }
 0x439   :  { %259 = vrot.lane.b32.xlu1 %v258_v26, %s1026_s2 }
 0x4ab   :  { %v260_v27 = vpop.permute.xlu1 %259 }
 0x4ac   :  { %856 = vmatmul.msk.f32.vlgmr.msra.gmra.mxu3 %vm98_vm3, %v260_v27 }
 0x52f   :  { %v280_v28 = vpop.f32.mrf.mxu3 }
 0x530   :  { %v281_v29 = vadd.f32 %v1105_v12, %v280_v28 }
 0x532   :  { %297 = vrot.lane.b32.xlu0 %v281_v29, %s1025_s25  ;;  %v284_v30 = vrot.slane %v281_v29, 1  ;;  %v287_v38 = vadd.f32 %v281_v29, %v253_v36 }
 0x534   :  { %299 = vrot.lane.b32.xlu2 %v284_v30, %s1025_s25  ;;  %v288_v32 = vadd.f32 %v284_v30, %v254_v31  ;;  %v289_v41 = vmul.f32 0.5, %v287_v38 }
 0x536   :  { %v290_v33 = vmul.f32 0.5, %v288_v32 }
 0x538   :  { %891 = vtanh.f32 %v290_v33 }
 0x539   :  { %893 = vtanh.f32 %v289_v41 }
 0x53e   :  { %v892_v34 = vpop.eup %891 }
 0x53f   :  { %v294_v35 = vadd.f32 1.0, %v892_v34  ;;  %v894_v42 = vpop.eup %893 }
 0x540   :  { %v293_v43 = vadd.f32 1.0, %v894_v42 }
 0x541   :  { %v296_v37 = vmul.f32 0.5, %v294_v35 }
 0x542   :  { %v295_v44 = vmul.f32 0.5, %v293_v43 }
 0x543   :  { %v318_v55 = vsub.f32 1.0, %v296_v37  ;;  %v330_v58 = vmul.f32 %v296_v37, %v252_v23 }
 0x544   :  { %v317_v54 = vsub.f32 1.0, %v295_v44  ;;  %v329_v60 = vmul.f32 %v295_v44, %v251_v24 }
 0x58e   :  { %v300_v39 = vpop.permute.xlu2 %299 }
 0x58f   :  { %v304_v40 = vmul.f32 %v300_v39, %v296_v37 }
 0x591   :  { %309 = vrot.lane.b32.xlu1 %v304_v40, %s1025_s25 }
 0x5a4   :  { %v298_v45 = vpop.permute.xlu0 %297 }
 0x5a5   :  { %v303_v46 = vmul.f32 %v298_v45, %v295_v44  ;;  %v413_v44 = vld [vmem:[#allocation2 + $0x4] sm:$0x1] }
 0x5a7   :  { %307 = vrot.lane.b32.xlu2 %v303_v46, %s1025_s25 }
 0x601   :  { %v308_v47 = vpop.permute.xlu2 %307 }
 0x602   :  { %v313_v48 = vadd.f32 %v308_v47, %v253_v36 }
 0x603   :  { %v310_v49 = vpop.permute.xlu1 %309 }
 0x604   :  { %895 = vtanh.f32 %v313_v48  ;;  %v314_v50 = vadd.f32 %v310_v49, %v254_v31 }
 0x606   :  { %897 = vtanh.f32 %v314_v50 }
 0x60a   :  { %v896_v51 = vpop.eup %895 }
 0x60b   :  { %321 = vrot.lane.b32.xlu1 %v896_v51, %s1026_s2 }
 0x60c   :  { %v898_v52 = vpop.eup %897 }
 0x60d   :  { %323 = vrot.lane.b32.xlu0 %v898_v52, %s1026_s2  ;;  %v414_v52 = vld [vmem:[#allocation2 + $0xc] sm:$0x1] }
 0x67d   :  { %v322_v53 = vpop.permute.xlu1 %321 }
 0x67e   :  { %v327_v57 = vmul.f32 %v322_v53, %v317_v54 }
 0x67f   :  { %v324_v56 = vpop.permute.xlu0 %323 }
 0x680   :  { %v328_v59 = vmul.f32 %v324_v56, %v318_v55  ;;  %v331_v62 = vadd.f32 %v329_v60, %v327_v57 }
 0x682   :  { %v332_v61 = vadd.f32 %v330_v58, %v328_v59 }
 0x684   :  { %v337_v63 = vrot.slane %v332_v61, 7 }
 0x686   :  { %v338_v0 = vsel %vm177_vm2, %v337_v63, %v331_v62 }
 0x687   :  { %339 = vrot.lane.b32.xlu2 %v338_v0, %s1026_s2 }
 0x6e1   :  { %v340_v1 = vpop.permute.xlu2 %339 }
 0x6e2   :  { %857 = vmatmul.msk.f32.vlgmr.msrb.gmra.mxu1 %vm98_vm3, %v340_v1 }
 0x75f   :  { %v360_v2 = vpop.f32.mrf.mxu1 }
 0x760   :  { %v361_v3 = vadd.f32 %v1105_v12, %v360_v2 }
 0x762   :  { %377 = vrot.lane.b32.xlu1 %v361_v3, %s1025_s25  ;;  %v364_v4 = vrot.slane %v361_v3, 1  ;;  %v367_v6 = vadd.f32 %v361_v3, %v333_v5 }
 0x764   :  { %379 = vrot.lane.b32.xlu0 %v364_v4, %s1025_s25  ;;  %v368_v8 = vadd.f32 %v364_v4, %v334_v7  ;;  %v369_v9 = vmul.f32 0.5, %v367_v6 }
 0x766   :  { %v370_v10 = vmul.f32 0.5, %v368_v8  ;;  %899 = vtanh.f32 %v369_v9 }
 0x768   :  { %901 = vtanh.f32 %v370_v10 }
 0x76c   :  { %v900_v11 = vpop.eup %899 }
 0x76d   :  { %v373_v14 = vadd.f32 1.0, %v900_v11 }
 0x76e   :  { %v902_v13 = vpop.eup %901 }
 0x76f   :  { %v374_v15 = vadd.f32 1.0, %v902_v13  ;;  %v375_v16 = vmul.f32 0.5, %v373_v14 }
 0x771   :  { %v376_v19 = vmul.f32 0.5, %v374_v15  ;;  %v397_v29 = vsub.f32 1.0, %v375_v16  ;;  %v409_v35 = vmul.f32 %v375_v16, %v331_v62 }
 0x773   :  { %v398_v30 = vsub.f32 1.0, %v376_v19  ;;  %v410_v33 = vmul.f32 %v376_v19, %v332_v61 }
 0x7d4   :  { %v378_v17 = vpop.permute.xlu1 %377 }
 0x7d5   :  { %v383_v18 = vmul.f32 %v378_v17, %v375_v16 }
 0x7d6   :  { %v380_v20 = vpop.permute.xlu0 %379 }
 0x7d7   :  { %v384_v21 = vmul.f32 %v380_v20, %v376_v19  ;;  %387 = vrot.lane.b32.xlu0 %v383_v18, %s1025_s25  ;;  %v494_v19 = vld [vmem:[#allocation2 + $0xd] sm:$0x1] }
 0x7d9   :  { %389 = vrot.lane.b32.xlu2 %v384_v21, %s1025_s25 }
 0x833   :  { %v390_v22 = vpop.permute.xlu2 %389 }
 0x834   :  { %v394_v23 = vadd.f32 %v390_v22, %v334_v7 }
 0x836   :  { %903 = vtanh.f32 %v394_v23 }
 0x83c   :  { %v904_v24 = vpop.eup %903 }
 0x83d   :  { %403 = vrot.lane.b32.xlu1 %v904_v24, %s1026_s2  ;;  %v493_v24 = vld [vmem:[#allocation2 + $0x5] sm:$0x1] }
 0x849   :  { %v388_v25 = vpop.permute.xlu0 %387 }
 0x84a   :  { %v393_v26 = vadd.f32 %v388_v25, %v333_v5 }
 0x84c   :  { %905 = vtanh.f32 %v393_v26 }
 0x852   :  { %v906_v27 = vpop.eup %905 }
 0x853   :  { %401 = vrot.lane.b32.xlu2 %v906_v27, %s1026_s2 }
 0x8ad   :  { %v402_v28 = vpop.permute.xlu2 %401 }
 0x8ae   :  { %v407_v32 = vmul.f32 %v402_v28, %v397_v29 }
 0x8af   :  { %v404_v31 = vpop.permute.xlu1 %403 }
 0x8b0   :  { %v408_v34 = vmul.f32 %v404_v31, %v398_v30  ;;  %v411_v37 = vadd.f32 %v409_v35, %v407_v32 }
 0x8b2   :  { %v412_v36 = vadd.f32 %v410_v33, %v408_v34 }
 0x8b4   :  { %v417_v38 = vrot.slane %v412_v36, 7 }
 0x8b6   :  { %v418_v39 = vsel %vm177_vm2, %v417_v38, %v411_v37 }
 0x8b7   :  { %419 = vrot.lane.b32.xlu0 %v418_v39, %s1026_s2 }
 0x929   :  { %v420_v40 = vpop.permute.xlu0 %419 }
 0x92a   :  { %858 = vmatmul.msk.f32.vlgmr.msrb.gmra.mxu2 %vm98_vm3, %v420_v40 }
 0x9ad   :  { %v440_v41 = vpop.f32.mrf.mxu2 }
 0x9ae   :  { %v441_v42 = vadd.f32 %v1105_v12, %v440_v41 }
 0x9b0   :  { %457 = vrot.lane.b32.xlu2 %v441_v42, %s1025_s25  ;;  %v444_v43 = vrot.slane %v441_v42, 1  ;;  %v447_v45 = vadd.f32 %v441_v42, %v413_v44 }
 0x9b2   :  { %459 = vrot.lane.b32.xlu1 %v444_v43, %s1025_s25  ;;  %v449_v46 = vmul.f32 0.5, %v447_v45  ;;  %v448_v53 = vadd.f32 %v444_v43, %v414_v52 }
 0x9b4   :  { %907 = vtanh.f32 %v449_v46  ;;  %v450_v54 = vmul.f32 0.5, %v448_v53 }
 0x9b6   :  { %909 = vtanh.f32 %v450_v54 }
 0x9ba   :  { %v908_v47 = vpop.eup %907 }
 0x9bb   :  { %v453_v48 = vadd.f32 1.0, %v908_v47 }
 0x9bc   :  { %v910_v55 = vpop.eup %909 }
 0x9bd   :  { %v455_v49 = vmul.f32 0.5, %v453_v48  ;;  %v454_v56 = vadd.f32 1.0, %v910_v55 }
 0x9bf   :  { %v456_v57 = vmul.f32 0.5, %v454_v56  ;;  %v477_v3 = vsub.f32 1.0, %v455_v49  ;;  %v489_v9 = vmul.f32 %v455_v49, %v411_v37 }
 0x9c1   :  { %v478_v4 = vsub.f32 1.0, %v456_v57  ;;  %v490_v7 = vmul.f32 %v456_v57, %v412_v36 }
 0xa0a   :  { %v458_v50 = vpop.permute.xlu2 %457 }
 0xa0b   :  { %v463_v51 = vmul.f32 %v458_v50, %v455_v49 }
 0xa0d   :  { %467 = vrot.lane.b32.xlu1 %v463_v51, %s1025_s25 }
 0xa24   :  { %v460_v58 = vpop.permute.xlu1 %459 }
 0xa25   :  { %v464_v59 = vmul.f32 %v460_v58, %v456_v57  ;;  %v573_v57 = vld [vmem:[#allocation2 + $0x6] sm:$0x1] }
 0xa27   :  { %469 = vrot.lane.b32.xlu0 %v464_v59, %s1025_s25  ;;  %v574_v59 = vld [vmem:[#allocation2 + $0xe] sm:$0x1] }
 0xa7f   :  { %v468_v60 = vpop.permute.xlu1 %467 }
 0xa80   :  { %v473_v61 = vadd.f32 %v468_v60, %v413_v44 }
 0xa82   :  { %911 = vtanh.f32 %v473_v61 }
 0xa88   :  { %v912_v62 = vpop.eup %911 }
 0xa89   :  { %481 = vrot.lane.b32.xlu0 %v912_v62, %s1026_s2 }
 0xa99   :  { %v470_v63 = vpop.permute.xlu0 %469 }
 0xa9a   :  { %v474_v0 = vadd.f32 %v470_v63, %v414_v52 }
 0xa9c   :  { %913 = vtanh.f32 %v474_v0 }
 0xaa2   :  { %v914_v1 = vpop.eup %913 }
 0xaa3   :  { %483 = vrot.lane.b32.xlu2 %v914_v1, %s1026_s2 }
 0xafb   :  { %v482_v2 = vpop.permute.xlu0 %481 }
 0xafc   :  { %v487_v6 = vmul.f32 %v482_v2, %v477_v3 }
 0xafd   :  { %v484_v5 = vpop.permute.xlu2 %483 }
 0xafe   :  { %v488_v8 = vmul.f32 %v484_v5, %v478_v4  ;;  %v491_v11 = vadd.f32 %v489_v9, %v487_v6 }
 0xb00   :  { %v492_v10 = vadd.f32 %v490_v7, %v488_v8 }
 0xb02   :  { %v497_v13 = vrot.slane %v492_v10, 7 }
 0xb04   :  { %v498_v14 = vsel %vm177_vm2, %v497_v13, %v491_v11 }
 0xb05   :  { %499 = vrot.lane.b32.xlu1 %v498_v14, %s1026_s2 }
 0xb77   :  { %v500_v15 = vpop.permute.xlu1 %499 }
 0xb78   :  { %859 = vmatmul.msk.f32.vlgmr.msrb.gmra.mxu3 %vm98_vm3, %v500_v15 }
 0xbfb   :  { %v520_v16 = vpop.f32.mrf.mxu3 }
 0xbfc   :  { %v521_v17 = vadd.f32 %v1105_v12, %v520_v16 }
 0xbfe   :  { %537 = vrot.lane.b32.xlu0 %v521_v17, %s1025_s25  ;;  %v524_v18 = vrot.slane %v521_v17, 1  ;;  %v527_v26 = vadd.f32 %v521_v17, %v493_v24 }
 0xc00   :  { %539 = vrot.lane.b32.xlu2 %v524_v18, %s1025_s25  ;;  %v528_v20 = vadd.f32 %v524_v18, %v494_v19  ;;  %v529_v29 = vmul.f32 0.5, %v527_v26 }
 0xc02   :  { %v530_v21 = vmul.f32 0.5, %v528_v20 }
 0xc04   :  { %915 = vtanh.f32 %v530_v21 }
 0xc05   :  { %917 = vtanh.f32 %v529_v29 }
 0xc0a   :  { %v916_v22 = vpop.eup %915 }
 0xc0b   :  { %v534_v23 = vadd.f32 1.0, %v916_v22  ;;  %v918_v30 = vpop.eup %917 }
 0xc0c   :  { %v533_v31 = vadd.f32 1.0, %v918_v30 }
 0xc0d   :  { %v536_v25 = vmul.f32 0.5, %v534_v23 }
 0xc0e   :  { %v535_v32 = vmul.f32 0.5, %v533_v31 }
 0xc0f   :  { %v558_v43 = vsub.f32 1.0, %v536_v25  ;;  %v570_v46 = vmul.f32 %v536_v25, %v492_v10 }
 0xc10   :  { %v557_v42 = vsub.f32 1.0, %v535_v32  ;;  %v569_v48 = vmul.f32 %v535_v32, %v491_v11 }
 0xc5a   :  { %v540_v27 = vpop.permute.xlu2 %539 }
 0xc5b   :  { %v544_v28 = vmul.f32 %v540_v27, %v536_v25 }
 0xc5d   :  { %549 = vrot.lane.b32.xlu1 %v544_v28, %s1025_s25 }
 0xc70   :  { %v538_v33 = vpop.permute.xlu0 %537 }
 0xc71   :  { %v543_v34 = vmul.f32 %v538_v33, %v535_v32  ;;  %v653_v32 = vld [vmem:[#allocation2 + $0x7] sm:$0x1] }
 0xc73   :  { %547 = vrot.lane.b32.xlu2 %v543_v34, %s1025_s25 }
 0xccd   :  { %v548_v35 = vpop.permute.xlu2 %547 }
 0xcce   :  { %v553_v36 = vadd.f32 %v548_v35, %v493_v24 }
 0xccf   :  { %v550_v37 = vpop.permute.xlu1 %549 }
 0xcd0   :  { %919 = vtanh.f32 %v553_v36  ;;  %v554_v38 = vadd.f32 %v550_v37, %v494_v19 }
 0xcd2   :  { %921 = vtanh.f32 %v554_v38 }
 0xcd6   :  { %v920_v39 = vpop.eup %919 }
 0xcd7   :  { %561 = vrot.lane.b32.xlu1 %v920_v39, %s1026_s2 }
 0xcd8   :  { %v922_v40 = vpop.eup %921 }
 0xcd9   :  { %563 = vrot.lane.b32.xlu0 %v922_v40, %s1026_s2  ;;  %v654_v40 = vld [vmem:[#allocation2 + $0xf] sm:$0x1] }
 0xd49   :  { %v562_v41 = vpop.permute.xlu1 %561 }
 0xd4a   :  { %v567_v45 = vmul.f32 %v562_v41, %v557_v42 }
 0xd4b   :  { %v564_v44 = vpop.permute.xlu0 %563 }
 0xd4c   :  { %v568_v47 = vmul.f32 %v564_v44, %v558_v43  ;;  %v571_v50 = vadd.f32 %v569_v48, %v567_v45 }
 0xd4e   :  { %v572_v49 = vadd.f32 %v570_v46, %v568_v47 }
 0xd50   :  { %v577_v51 = vrot.slane %v572_v49, 7 }
 0xd52   :  { %v578_v52 = vsel %vm177_vm2, %v577_v51, %v571_v50 }
 0xd53   :  { %579 = vrot.lane.b32.xlu2 %v578_v52, %s1026_s2 }
 0xdad   :  { %v580_v53 = vpop.permute.xlu2 %579 }
 0xdae   :  { %860 = vmatmul.msk.f32.vlgmr.msrb.gmra.mxu0 %vm98_vm3, %v580_v53  ;;  %v736_v53 = vld [vmem:[%s1219_s5 + $0x18] sm:$0xff] }
 0xdaf   :  { %761 = vmatpush.msra.mxu2 %v736_v53 }
 0xe2b   :  { %v600_v54 = vpop.f32.mrf.mxu0 }
 0xe2c   :  { %v601_v55 = vadd.f32 %v1105_v12, %v600_v54  ;;  %v735_v54 = vld [vmem:[%s1219_s5 + $0x10] sm:$0xff] }
 0xe2d   :  { %762 = vmatpush.msra.mxu2 %v735_v54 }
 0xe2e   :  { %617 = vrot.lane.b32.xlu1 %v601_v55, %s1025_s25  ;;  %v604_v56 = vrot.slane %v601_v55, 1  ;;  %v607_v58 = vadd.f32 %v601_v55, %v573_v57  ;;  %v734_v55 = vld [vmem:[%s1219_s5 + $0x8] sm:$0xff] }
 0xe2f   :  { %763 = vmatpush.msra.mxu2 %v734_v55 }
 0xe30   :  { %619 = vrot.lane.b32.xlu0 %v604_v56, %s1025_s25  ;;  %v608_v60 = vadd.f32 %v604_v56, %v574_v59  ;;  %v609_v61 = vmul.f32 0.5, %v607_v58  ;;  %v733_v56 = vld [vmem:[%s1219_s5] sm:$0xff] }
 0xe31   :  { %764 = vmatpush.msra.mxu2 %v733_v56 }
 0xe32   :  { %v610_v62 = vmul.f32 0.5, %v608_v60  ;;  %923 = vtanh.f32 %v609_v61 }
 0xe34   :  { %925 = vtanh.f32 %v610_v62 }
 0xe38   :  { %v924_v63 = vpop.eup %923 }
 0xe39   :  { %v613_v1 = vadd.f32 1.0, %v924_v63 }
 0xe3a   :  { %v926_v0 = vpop.eup %925 }
 0xe3b   :  { %v614_v2 = vadd.f32 1.0, %v926_v0  ;;  %v615_v3 = vmul.f32 0.5, %v613_v1 }
 0xe3d   :  { %v616_v6 = vmul.f32 0.5, %v614_v2  ;;  %v637_v17 = vsub.f32 1.0, %v615_v3  ;;  %v649_v23 = vmul.f32 %v615_v3, %v571_v50 }
 0xe3f   :  { %v638_v18 = vsub.f32 1.0, %v616_v6  ;;  %v650_v21 = vmul.f32 %v616_v6, %v572_v49 }
 0xea0   :  { %v618_v4 = vpop.permute.xlu1 %617 }
 0xea1   :  { %v623_v5 = vmul.f32 %v618_v4, %v615_v3 }
 0xea2   :  { %v620_v7 = vpop.permute.xlu0 %619 }
 0xea3   :  { %v624_v8 = vmul.f32 %v620_v7, %v616_v6  ;;  %627 = vrot.lane.b32.xlu0 %v623_v5, %s1025_s25  ;;  %v874_v6 = vld [vmem:[%s1220_s6] ss:$0 sm:$0xff]  ;;  %s1028_s6 = smov [#allocation6]  }
 0xea5   :  { %629 = vrot.lane.b32.xlu2 %v624_v8, %s1025_s25 }
 0xeff   :  { %v630_v9 = vpop.permute.xlu2 %629 }
 0xf00   :  { %v634_v10 = vadd.f32 %v630_v9, %v574_v59 }
 0xf02   :  { %927 = vtanh.f32 %v634_v10 }
 0xf08   :  { %v928_v11 = vpop.eup %927 }
 0xf09   :  { %643 = vrot.lane.b32.xlu1 %v928_v11, %s1026_s2 }
 0xf15   :  { %v628_v13 = vpop.permute.xlu0 %627 }
 0xf16   :  { %v633_v14 = vadd.f32 %v628_v13, %v573_v57 }
 0xf18   :  { %929 = vtanh.f32 %v633_v14 }
 0xf1e   :  { %v930_v15 = vpop.eup %929 }
 0xf1f   :  { %641 = vrot.lane.b32.xlu2 %v930_v15, %s1026_s2 }
 0xf79   :  { %v642_v16 = vpop.permute.xlu2 %641 }
 0xf7a   :  { %v647_v20 = vmul.f32 %v642_v16, %v637_v17 }
 0xf7b   :  { %v644_v19 = vpop.permute.xlu1 %643 }
 0xf7c   :  { %v648_v22 = vmul.f32 %v644_v19, %v638_v18  ;;  %v651_v25 = vadd.f32 %v649_v23, %v647_v20 }
 0xf7e   :  { %v652_v24 = vadd.f32 %v650_v21, %v648_v22 }
 0xf80   :  { %v657_v26 = vrot.slane %v652_v24, 7 }
 0xf82   :  { %v658_v27 = vsel %vm177_vm2, %v657_v26, %v651_v25 }
 0xf83   :  { %659 = vrot.lane.b32.xlu0 %v658_v27, %s1026_s2 }
 0xff5   :  { %v660_v28 = vpop.permute.xlu0 %659 }
 0xff6   :  { %861 = vmatmul.msk.f32.vlgmr.msra.gmra.mxu1 %vm98_vm3, %v660_v28 }
0x1073   :  { %v680_v29 = vpop.f32.mrf.mxu1 }
0x1074   :  { %v681_v30 = vadd.f32 %v1105_v12, %v680_v29 }
0x1076   :  { %697 = vrot.lane.b32.xlu2 %v681_v30, %s1025_s25  ;;  %v684_v31 = vrot.slane %v681_v30, 1  ;;  %v687_v33 = vadd.f32 %v681_v30, %v653_v32 }
0x1078   :  { %699 = vrot.lane.b32.xlu1 %v684_v31, %s1025_s25  ;;  %v689_v34 = vmul.f32 0.5, %v687_v33  ;;  %v688_v41 = vadd.f32 %v684_v31, %v654_v40 }
0x107a   :  { %931 = vtanh.f32 %v689_v34  ;;  %v690_v42 = vmul.f32 0.5, %v688_v41 }
0x107c   :  { %933 = vtanh.f32 %v690_v42 }
0x1080   :  { %v932_v35 = vpop.eup %931 }
0x1081   :  { %v693_v36 = vadd.f32 1.0, %v932_v35 }
0x1082   :  { %v934_v12 = vpop.eup %933 }
0x1083   :  { %v695_v37 = vmul.f32 0.5, %v693_v36  ;;  %v694_v43 = vadd.f32 1.0, %v934_v12 }
0x1085   :  { %v696_v44 = vmul.f32 0.5, %v694_v43  ;;  %v717_v58 = vsub.f32 1.0, %v695_v37  ;;  %v729_v0 = vmul.f32 %v695_v37, %v651_v25 }
0x1087   :  { %v718_v59 = vsub.f32 1.0, %v696_v44  ;;  %v730_v62 = vmul.f32 %v696_v44, %v652_v24 }
0x10d0   :  { %v698_v38 = vpop.permute.xlu2 %697 }
0x10d1   :  { %v703_v39 = vmul.f32 %v698_v38, %v695_v37 }
0x10d3   :  { %707 = vrot.lane.b32.xlu1 %v703_v39, %s1025_s25 }
0x10ea   :  { %v700_v45 = vpop.permute.xlu1 %699 }
0x10eb   :  { %v704_v46 = vmul.f32 %v700_v45, %v696_v44 }
0x10ed   :  { %709 = vrot.lane.b32.xlu0 %v704_v46, %s1025_s25 }
0x1145   :  { %v708_v47 = vpop.permute.xlu1 %707 }
0x1146   :  { %v713_v48 = vadd.f32 %v708_v47, %v653_v32 }
0x1148   :  { %935 = vtanh.f32 %v713_v48 }
0x114e   :  { %v936_v49 = vpop.eup %935 }
0x114f   :  { %721 = vrot.lane.b32.xlu0 %v936_v49, %s1026_s2 }
0x115f   :  { %v710_v50 = vpop.permute.xlu0 %709 }
0x1160   :  { %v714_v51 = vadd.f32 %v710_v50, %v654_v40 }
0x1162   :  { %937 = vtanh.f32 %v714_v51 }
0x1168   :  { %v938_v52 = vpop.eup %937 }
0x1169   :  { %723 = vrot.lane.b32.xlu2 %v938_v52, %s1026_s2 }
0x11c1   :  { %v722_v57 = vpop.permute.xlu0 %721 }
0x11c2   :  { %v727_v61 = vmul.f32 %v722_v57, %v717_v58 }
0x11c3   :  { %v724_v60 = vpop.permute.xlu2 %723 }
0x11c4   :  { %v728_v63 = vmul.f32 %v724_v60, %v718_v59  ;;  %v731_v2 = vadd.f32 %v729_v0, %v727_v61 }
0x11c6   :  { %v732_v1 = vadd.f32 %v730_v62, %v728_v63 }
0x11c8   :  { %v743_v3 = vrot.slane %v732_v1, 7 }
0x11ca   :  { %v744_v4 = vsel %vm177_vm2, %v743_v3, %v731_v2 }
0x11cb   :  { %745 = vrot.lane.b32.xlu1 %v744_v4, %s1026_s2 }
0x123d   :  { %v746_v5 = vpop.permute.xlu1 %745 }
0x123e   :  { %862 = vmatmul.msk.f32.vlgmr.msra.gmra.mxu2 %vm98_vm3, %v746_v5 }
0x12c1   :  { %v766_v7 = vpop.f32.mrf.mxu2 }
0x12c2   :  { %v767_v8 = vadd.f32 %v874_v6, %v766_v7 }
0x12c4   :  { %v769_v9 = vmul.f32 %v767_v8, %v767_v8 }
0x12c6   :  { %788 = vrot.lane.b32.xlu2 %v769_v9, %s1027_s13  ;;  %v771_v10 = vsel %vm770_vm4, %v769_v9, 0.0 }
0x12c7   :  { %772 = vadd.xlane.f32.xlu1 %v771_v10 }
0x1320   :  { %v789_v11 = vpop.permute.xlu2 %788 }
0x1321   :  { %v791_v13 = vadd.f32 %v789_v11, %v769_v9 }
0x1323   :  { %939 = vrsqrt.f32 %v791_v13  ;;  %vm798_vm6 = vweird.f32 %v791_v13 }
0x1329   :  { %v940_v14 = vpop.eup %939 }
0x132a   :  { %v793_v15 = vmul.f32 %v940_v14, %v791_v13  ;;  %vm799_vm5 = vweird.f32 %v940_v14 }
0x132b   :  { %vm800_vm7 = vmor %vm798_vm6, %vm799_vm5 }
0x132c   :  { %v794_v16 = vmul.f32 %v940_v14, %v793_v15 }
0x132e   :  { %v795_v17 = vmul.f32 0.5, %v794_v16 }
0x1330   :  { %v796_v18 = vsub.f32 1.5, %v795_v17 }
0x1332   :  { %v797_v19 = vmul.f32 %v940_v14, %v796_v18 }
0x1334   :  { %v801_v20 = vsel %vm800_vm7, %v940_v14, %v797_v19 }
0x1335   :  { %804 = vrot.lane.b32.xlu0 %v801_v20, %s1023_s11  ;;  %v802_v21 = vmul.f32 %v801_v20, %v767_v8  ;;  %s825_s11 = sshll.u32 %s1028_s6, 4  ;;  %s826_s11 = int_to_ptr.vmem [resolvable:$true] %s825_s11 }
0x1337   :  { %809 = vrot.lane.b32.xlu2 %v802_v21, %s1027_s13 }
0x133a   :  { %v773_v22 = vpop.xlane.xlu1 %772 }
0x133b   :  { %941 = vrsqrt.f32 %v773_v22  ;;  %vm780_vm9 = vweird.f32 %v773_v22 }
0x1341   :  { %v942_v23 = vpop.eup %941 }
0x1342   :  { %v775_v24 = vmul.f32 %v942_v23, %v773_v22  ;;  %vm781_vm8 = vweird.f32 %v942_v23 }
0x1343   :  { %vm782_vm10 = vmor %vm780_vm9, %vm781_vm8 }
0x1344   :  { %v776_v25 = vmul.f32 %v942_v23, %v775_v24 }
0x1346   :  { %v777_v26 = vmul.f32 0.5, %v776_v25 }
0x1348   :  { %v778_v27 = vsub.f32 1.5, %v777_v26 }
0x134a   :  { %v779_v28 = vmul.f32 %v942_v23, %v778_v27 }
0x134c   :  { %v783_v29 = vsel %vm782_vm10, %v942_v23, %v779_v28 }
0x134d   :  { %v784_v30 = vmul.f32 3.1622777, %v783_v29 }
0x134f   :  { %v785_v31 = vmul.f32 %v784_v30, %v767_v8 }
0x1351   :  { %786 = vst.msk [vmem:[#allocation6] sm:$0x3] %vm770_vm4, %v785_v31 }
0x1352   :  { %830 = dma.vmem_to_hbm [thread:$0]  %s826_s11, 32, %s828_s15, [#allocation5]  }
0x1391   :  { %v810_v34 = vpop.permute.xlu2 %809 }
0x13a7   :  { %v805_v32 = vpop.permute.xlu0 %804 }
0x13a8   :  { %v807_v33 = vmul.f32 %v805_v32, %v767_v8 }
0x13aa   :  { %813 = vrot.lane.b32.xlu0 %v807_v33, %s1027_s13 }
0x141c   :  { %v814_v35 = vpop.permute.xlu0 %813 }
0x141d   :  { %v817_v36 = vsel %vm816_vm11, %v810_v34, %v814_v35 }
0x141e   :  { %819 = vst.msk [vmem:[#allocation7] sm:$0x3] %vm818_vm12, %v817_v36 }
0x141f   :  { %841 = dma.vmem_to_hbm [thread:$0]  %s837_s17, 32, %s839_s20, [#allocation8]  }
0x1420   :  { %1017 = dma.done.wait [#allocation5], 32  }
0x1421   :  { %1018 = vsyncadd [#allocation5], 4294967264 }
0x1422   :  { %1019 = dma.done.wait [#allocation8], 32  }
0x1423   :  { %1020 = vsyncadd [#allocation8], 4294967264 }
0x1424   :  { %850 = vsyncpa [#allocation4], 1 }
0x1425   :  { %851 = vsyncpa [#allocation5], 1 }
0x1426   :  { %852 = vsyncpa [#allocation8], 1 }

</bundles_post_ra>
